<compile_context>
chip_gen: v7x
topology: tpu7x:2x2x1
jax: 0.10.0
libtpu: 0.0.40
codegen_flags: <defaults>
</compile_context>

<pallas_src>
import functools

import jax
import jax.numpy as jnp
from jax.experimental import pallas as pl
from jax.experimental.pallas import tpu as pltpu

_LANE = 128
_LN2 = 0.6931471805599453


def _round_up(x, m):
    return (x + m - 1) // m * m


def _double_perceiver_kernel(tok_ref, hid_ref, wkv_ref, wqo_ref, vec_ref,
                             out_ref, *, n_ent, n_ally, emb):
    f32 = jnp.float32
    E = _LANE
    bt = hid_ref.shape[0]
    n_cols = tok_ref.shape[0]                 # bt * n_ent
    scale = 1.0 / float(emb) ** 0.5

    # Fused token embedding + all six K/V projections: one lane-dense
    # (bt*n_ent, feat) @ (feat, 6*128) bf16 MXU matmul, f32 accumulation.
    kv = jnp.dot(tok_ref[...], wkv_ref[...], preferred_element_type=f32)
    kv = kv + vec_ref[0:1, :]                 # fused b_in @ [Wk|Wv]x3 bias (f32)
    k1 = kv[:, 0 * E:1 * E]
    v1 = kv[:, 1 * E:2 * E]
    k2 = kv[:, 2 * E:3 * E]
    v2 = kv[:, 3 * E:4 * E]
    k3 = kv[:, 4 * E:5 * E]
    v3 = kv[:, 5 * E:6 * E]

    wqo = wqo_ref[...].astype(f32)            # (128, 5*128) packed weight slab
    wq1 = wqo[:, 0 * E:1 * E]
    wo1 = wqo[:, 1 * E:2 * E]
    wq2 = wqo[:, 2 * E:3 * E]
    wo2 = wqo[:, 3 * E:4 * E]
    woact = wqo[:, 4 * E:5 * E]               # Wo3 @ W_act, at out cols [emb, emb+a_dim)

    q3 = vec_ref[1:2, 0:E]                    # action_query @ Wq3 (128-lane padded)
    boact = vec_ref[2:3, 0:E]                 # fused readout bias, at cols [emb, emb+a_dim)

    # Hidden state zero-extended in-register to the 128-lane slab (cols [0, emb)).
    h = jnp.concatenate(
        [hid_ref[...].astype(f32), jnp.zeros((bt, E - emb), f32)], axis=-1)

    # Block-diagonal masks over the deduplicated token slab (each batch row owns
    # columns [row*n_ent, (row+1)*n_ent)).
    row = jax.lax.broadcasted_iota(jnp.int32, (bt, n_cols), 0)
    col = jax.lax.broadcasted_iota(jnp.int32, (bt, n_cols), 1)
    local = col - row * n_ent
    own = (local >= 0) & (local < n_ent)
    m_enc = own & (local < n_ally)                      # ally / encoder tokens
    m_dec = own & ((local == 0) | (local >= n_ally))    # ally0 + enemies (decoder)
    # Readout attends all tokens; in the reference module ally0 appears twice
    # (once as encoder token, once as first decoder token) -> +ln(2) on its logit.
    bonus = jnp.where(own & (local == 0), _LN2, 0.0).astype(f32)

    def attend(q, k, v, mask, extra=None):
        # (bt, 128) x (bt*n_ent, 128) -> (bt, bt*n_ent) block-diagonal scores.
        s = jax.lax.dot_general(q, k, (((1,), (1,)), ((), ())),
                                preferred_element_type=f32) * scale
        if extra is not None:
            s = s + extra
        s = jnp.where(mask, s, -1e30)
        s = s - jnp.max(s, axis=-1, keepdims=True)
        p = jnp.exp(s)
        p = p * pl.reciprocal(jnp.sum(p, axis=-1, keepdims=True), approx=False)
        return jnp.dot(p, v, preferred_element_type=f32)     # (bt, 128)

    # Stage 1: hidden latent attends ally (encoder) tokens.
    qh1 = jnp.dot(h, wq1, preferred_element_type=f32)
    h1 = jnp.dot(attend(qh1, k1, v1, m_enc), wo1, preferred_element_type=f32) + h
    # Stage 2: latent attends ally0+enemy (decoder) tokens -> new hidden state.
    qh2 = jnp.dot(h1, wq2, preferred_element_type=f32)
    h2 = jnp.dot(attend(qh2, k2, v2, m_dec), wo2, preferred_element_type=f32) + h1
    # Readout: pre-projected action query attends all tokens; Wo3 and the
    # action_embedding Linear are fused into woact/boact (cols [emb, emb+a_dim)).
    ctx3 = attend(jnp.broadcast_to(q3, (bt, E)), k3, v3, own, extra=bonus)
    qvals = jnp.dot(ctx3, woact, preferred_element_type=f32) + boact

    # Single fused, lane-dense output slab: [ hidden (emb) | q-values (a_dim) | 0 ].
    out_ref[...] = (h2 + qvals).astype(out_ref.dtype)


def double_perceiver_agent_forward(inputs, hidden_state, params, *,
                                   task_ally_num, batch_tile=64):
    """Mirrors DoublePerceiverAgent.forward(inputs, hidden_state, task_ally_num=...)."""
    b, n_ent, feat = inputs.shape
    emb = params["action_query"].shape[-1]
    a_dim = params["w_act"].shape[-1]
    E = _LANE
    if emb + a_dim > E:
        raise ValueError("emb + action_dim must fit a single 128-lane output slab")

    # Batch tile: multiple of 8, capped by batch_tile; prefer >=2 grid steps so
    # the "parallel" grid axis can shard across v7x's two TensorCores.
    bt = max(8, (min(int(batch_tile), max(8, b // 2)) // 8) * 8)
    b_pad = _round_up(b, bt)

    bf16 = jnp.bfloat16
    f32 = jnp.float32

    # Tokens fed directly (no encoder/decoder concat, no duplicated ally0 token);
    # the bf16 cast + batch pad is a single fused XLA pass.
    tok = jnp.pad(inputs.astype(bf16), ((0, b_pad - b), (0, 0), (0, 0)))
    tok_flat = tok.reshape(b_pad * n_ent, feat)
    hid = jnp.pad(hidden_state.reshape(b, emb).astype(bf16),
                  ((0, b_pad - b), (0, 0)))

    # ---- algebraic weight fusion (tiny one-off matmuls, done per call) ----
    w_attn = params["w_attn"]        # (3, 4, emb, emb) = [Wq, Wk, Wv, Wo] x 3 stages

    def lane_pad(w):                 # (emb, x) -> (emb, 128), zero-padded columns
        return jnp.pad(w, ((0, 0), (0, E - w.shape[1])))

    wkv_cat = jnp.concatenate(
        [lane_pad(w_attn[0, 1]), lane_pad(w_attn[0, 2]),
         lane_pad(w_attn[1, 1]), lane_pad(w_attn[1, 2]),
         lane_pad(w_attn[2, 1]), lane_pad(w_attn[2, 2])], axis=1)   # (emb, 6*128)
    w_kv = jnp.dot(params["w_in"], wkv_cat).astype(bf16)            # (feat, 6*128)
    b_kv = jnp.dot(params["b_in"], wkv_cat)                         # (1, 6*128)

    def block128(w, col_off=0):      # embed an (emb, x) block into a (128, 128) tile
        z = jnp.zeros((E, E), f32)
        return z.at[:emb, col_off:col_off + w.shape[1]].set(w)

    wqo = jnp.concatenate(
        [block128(w_attn[0, 0]), block128(w_attn[0, 3]),
         block128(w_attn[1, 0]), block128(w_attn[1, 3]),
         block128(jnp.dot(w_attn[2, 3], params["w_act"]), col_off=emb)],
        axis=1).astype(bf16)                                        # (128, 5*128)

    q3 = jnp.dot(params["action_query"], w_attn[2, 0])              # (1, emb)
    boact = (jnp.dot(params["action_query"], params["w_act"])
             + params["b_act"])                                     # (1, a_dim)
    vec = jnp.zeros((3, 6 * E), f32)
    vec = vec.at[0, :].set(b_kv[0])                 # row 0: fused K/V bias
    vec = vec.at[1, :emb].set(q3[0])                # row 1: action query @ Wq3
    vec = vec.at[2, emb:emb + a_dim].set(boact[0])  # row 2: fused readout bias

    kernel = functools.partial(_double_perceiver_kernel,
                               n_ent=n_ent, n_ally=task_ally_num, emb=emb)

    out = pl.pallas_call(
        kernel,
        out_shape=jax.ShapeDtypeStruct((b_pad, E), bf16),
        grid_spec=pltpu.PrefetchScalarGridSpec(
            num_scalar_prefetch=0,
            grid=(b_pad // bt,),
            in_specs=[
                pl.BlockSpec((bt * n_ent, feat), lambda i: (i, 0)),  # token slab (bf16)
                pl.BlockSpec((bt, emb), lambda i: (i, 0)),           # hidden (bf16, un-padded)
                pl.BlockSpec((feat, 6 * E), lambda i: (0, 0)),       # fused W_in@[Wk|Wv]x3
                pl.BlockSpec((E, 5 * E), lambda i: (0, 0)),          # [Wq1|Wo1|Wq2|Wo2|Wo3@Wact]
                pl.BlockSpec((3, 6 * E), lambda i: (0, 0)),          # packed biases / query
            ],
            out_specs=pl.BlockSpec((bt, E), lambda i: (i, 0)),       # [hidden | q | 0]
        ),
        compiler_params=pltpu.CompilerParams(
            dimension_semantics=("parallel",),
            vmem_limit_bytes=48 * 1024 * 1024),
    )(tok_flat, hid, w_kv, wqo, vec)

    out = out[:b].astype(f32)
    hidden = out[:, :emb]
    # q = action_embedding(outputs.view(-1, emb)).view(b, -1, 1)
    q = out[:, emb:emb + a_dim].reshape(b, -1, 1)
    return q, hidden


def make_params(key, feat, emb, action_dim):
    ks = jax.random.split(key, 8)
    return {
        # nn.Parameter(torch.rand(1, emb)) — uniform [0, 1)
        "action_query": jax.random.uniform(ks[0], (1, emb), jnp.float32),
        "hidden_query": jax.random.uniform(ks[1], (1, emb), jnp.float32),  # unused in forward
        "w_in": 0.1 * jax.random.normal(ks[2], (feat, emb), jnp.float32),
        "b_in": 0.1 * jax.random.normal(ks[3], (1, emb), jnp.float32),
        # stacked [Wq, Wk, Wv, Wo] for the 3 cross-attention blocks.
        "w_attn": 0.1 * jax.random.normal(ks[4], (3, 4, emb, emb), jnp.float32),
        "w_act": 0.1 * jax.random.normal(ks[5], (emb, action_dim), jnp.float32),
        "b_act": 0.1 * jax.random.normal(ks[6], (1, action_dim), jnp.float32),
    }


if __name__ == "__main__":
    key = jax.random.PRNGKey(0)
    B = 2
    task_ally_num = 5
    task_enemy_num = 3
    feat = 16               # per-entity observation feature size
    emb = 32                # args.emb
    action_space_size = 6
    action_dim = action_space_size + task_enemy_num  # args.action_space_size + args.enemy_num

    k_in, k_par = jax.random.split(key)
    n_entities = task_ally_num + task_enemy_num
    inputs = jax.random.normal(k_in, (B, n_entities, feat), jnp.float32)
    # init_hidden(): zeros(1, emb), expanded over the batch.
    hidden_state = jnp.zeros((B, emb), jnp.float32)

    params = make_params(k_par, feat, emb, action_dim)

    fwd = jax.jit(functools.partial(double_perceiver_agent_forward,
                                    task_ally_num=task_ally_num))
    q, hidden = fwd(inputs, hidden_state, params)
    jax.block_until_ready((q, hidden))

    assert q.shape == (B, action_dim, 1), q.shape
    assert hidden.shape == (B, emb), hidden.shape
    assert bool(jnp.all(jnp.isfinite(q))) and bool(jnp.all(jnp.isfinite(hidden)))
    print("KERNEL_OK")
</pallas_src>

<mosaic_0001>
module attributes {stable_mosaic.version = 11 : i64} {
  func.func @_double_perceiver_kernel(%arg0: i32, %arg1: memref<64x16xbf16, #tpu.memory_space<vmem>>, %arg2: memref<8x32xbf16, #tpu.memory_space<vmem>>, %arg3: memref<16x768xbf16, #tpu.memory_space<vmem>>, %arg4: memref<128x640xbf16, #tpu.memory_space<vmem>>, %arg5: memref<3x768xf32, #tpu.memory_space<vmem>>, %arg6: memref<8x128xbf16, #tpu.memory_space<vmem>>) attributes {dimension_semantics = [#tpu.dimension_semantics<parallel>], iteration_bounds = array<i64: 1>, scalar_prefetch = 0 : i64, scratch_operands = 0 : i64, tpu.core_type = #tpu.core_type<tc>, window_params = [{transform_indices = @transform_0, window_bounds = array<i64: 64, 16>}, {transform_indices = @transform_1, window_bounds = array<i64: 8, 32>}, {pipeline_mode = #tpu.pipeline_mode<synchronous>, transform_indices = @transform_2, window_bounds = array<i64: 16, 768>}, {pipeline_mode = #tpu.pipeline_mode<synchronous>, transform_indices = @transform_3, window_bounds = array<i64: 128, 640>}, {pipeline_mode = #tpu.pipeline_mode<synchronous>, transform_indices = @transform_4, window_bounds = array<i64: 3, 768>}, {transform_indices = @transform_5, window_bounds = array<i64: 8, 128>}]} {
    %c0 = arith.constant 0 : index
    %c0_0 = arith.constant 0 : index
    %0 = vector.load %arg1[%c0, %c0_0] : memref<64x16xbf16, #tpu.memory_space<vmem>>, vector<64x16xbf16>
    %c0_1 = arith.constant 0 : index
    %c0_2 = arith.constant 0 : index
    %1 = vector.load %arg3[%c0_1, %c0_2] : memref<16x768xbf16, #tpu.memory_space<vmem>>, vector<16x768xbf16>
    %cst = arith.constant dense<0.000000e+00> : vector<64x768xf32>
    %2 = tpu.matmul %0, %1, %cst {dimension_numbers = #tpu.dot_dimension_numbers<[1], [0], [0], [1], [0, 0, 1, 1], [], []>} : vector<64x16xbf16>, vector<16x768xbf16>, vector<64x768xf32> -> vector<64x768xf32>
    %c0_3 = arith.constant 0 : index
    %c0_4 = arith.constant 0 : index
    %3 = vector.load %arg5[%c0_3, %c0_4] : memref<3x768xf32, #tpu.memory_space<vmem>>, vector<1x768xf32>
    %4 = vector.broadcast %3 : vector<1x768xf32> to vector<64x768xf32>
    %5 = arith.addf %2, %4 : vector<64x768xf32>
    %6 = vector.extract_strided_slice %5 {offsets = [0, 0], sizes = [64, 128], strides = [1, 1]} : vector<64x768xf32> to vector<64x128xf32>
    %7 = vector.extract_strided_slice %5 {offsets = [0, 128], sizes = [64, 128], strides = [1, 1]} : vector<64x768xf32> to vector<64x128xf32>
    %8 = vector.extract_strided_slice %5 {offsets = [0, 256], sizes = [64, 128], strides = [1, 1]} : vector<64x768xf32> to vector<64x128xf32>
    %9 = vector.extract_strided_slice %5 {offsets = [0, 384], sizes = [64, 128], strides = [1, 1]} : vector<64x768xf32> to vector<64x128xf32>
    %10 = vector.extract_strided_slice %5 {offsets = [0, 512], sizes = [64, 128], strides = [1, 1]} : vector<64x768xf32> to vector<64x128xf32>
    %11 = vector.extract_strided_slice %5 {offsets = [0, 640], sizes = [64, 128], strides = [1, 1]} : vector<64x768xf32> to vector<64x128xf32>
    %c0_5 = arith.constant 0 : index
    %c0_6 = arith.constant 0 : index
    %12 = vector.load %arg4[%c0_5, %c0_6] : memref<128x640xbf16, #tpu.memory_space<vmem>>, vector<128x640xbf16>
    %13 = arith.extf %12 : vector<128x640xbf16> to vector<128x640xf32>
    %14 = vector.extract_strided_slice %13 {offsets = [0, 0], sizes = [128, 128], strides = [1, 1]} : vector<128x640xf32> to vector<128x128xf32>
    %15 = vector.extract_strided_slice %13 {offsets = [0, 128], sizes = [128, 128], strides = [1, 1]} : vector<128x640xf32> to vector<128x128xf32>
    %16 = vector.extract_strided_slice %13 {offsets = [0, 256], sizes = [128, 128], strides = [1, 1]} : vector<128x640xf32> to vector<128x128xf32>
    %17 = vector.extract_strided_slice %13 {offsets = [0, 384], sizes = [128, 128], strides = [1, 1]} : vector<128x640xf32> to vector<128x128xf32>
    %18 = vector.extract_strided_slice %13 {offsets = [0, 512], sizes = [128, 128], strides = [1, 1]} : vector<128x640xf32> to vector<128x128xf32>
    %c1 = arith.constant 1 : index
    %c0_7 = arith.constant 0 : index
    %19 = vector.load %arg5[%c1, %c0_7] : memref<3x768xf32, #tpu.memory_space<vmem>>, vector<1x128xf32>
    %c2 = arith.constant 2 : index
    %c0_8 = arith.constant 0 : index
    %20 = vector.load %arg5[%c2, %c0_8] : memref<3x768xf32, #tpu.memory_space<vmem>>, vector<1x128xf32>
    %c0_9 = arith.constant 0 : index
    %c0_10 = arith.constant 0 : index
    %21 = vector.load %arg2[%c0_9, %c0_10] : memref<8x32xbf16, #tpu.memory_space<vmem>>, vector<8x32xbf16>
    %22 = arith.extf %21 : vector<8x32xbf16> to vector<8x32xf32>
    %cst_11 = arith.constant 0.000000e+00 : f32
    %23 = vector.broadcast %cst_11 : f32 to vector<8x96xf32>
    %24 = tpu.concatenate %22, %23 in 1 : vector<8x32xf32>, vector<8x96xf32> -> vector<8x128xf32>
    %25 = tpu.iota {dimensions = array<i32: 0>} : vector<8x64xi32>
    %26 = tpu.iota {dimensions = array<i32: 1>} : vector<8x64xi32>
    %c8_i32 = arith.constant 8 : i32
    %27 = vector.broadcast %c8_i32 : i32 to vector<8x64xi32>
    %28 = arith.muli %25, %27 : vector<8x64xi32>
    %29 = arith.subi %26, %28 : vector<8x64xi32>
    %c0_i32 = arith.constant 0 : i32
    %30 = vector.broadcast %c0_i32 : i32 to vector<8x64xi32>
    %31 = arith.cmpi sge, %29, %30 : vector<8x64xi32>
    %c8_i32_12 = arith.constant 8 : i32
    %32 = vector.broadcast %c8_i32_12 : i32 to vector<8x64xi32>
    %33 = arith.cmpi slt, %29, %32 : vector<8x64xi32>
    %34 = arith.andi %31, %33 : vector<8x64xi1>
    %c5_i32 = arith.constant 5 : i32
    %35 = vector.broadcast %c5_i32 : i32 to vector<8x64xi32>
    %36 = arith.cmpi slt, %29, %35 : vector<8x64xi32>
    %37 = arith.andi %34, %36 : vector<8x64xi1>
    %c0_i32_13 = arith.constant 0 : i32
    %38 = vector.broadcast %c0_i32_13 : i32 to vector<8x64xi32>
    %39 = arith.cmpi eq, %29, %38 : vector<8x64xi32>
    %c5_i32_14 = arith.constant 5 : i32
    %40 = vector.broadcast %c5_i32_14 : i32 to vector<8x64xi32>
    %41 = arith.cmpi sge, %29, %40 : vector<8x64xi32>
    %42 = arith.ori %39, %41 : vector<8x64xi1>
    %43 = arith.andi %34, %42 : vector<8x64xi1>
    %c0_i32_15 = arith.constant 0 : i32
    %44 = vector.broadcast %c0_i32_15 : i32 to vector<8x64xi32>
    %45 = arith.cmpi eq, %29, %44 : vector<8x64xi32>
    %46 = arith.andi %34, %45 : vector<8x64xi1>
    %cst_16 = arith.constant 0.693147182 : f32
    %cst_17 = arith.constant 0.000000e+00 : f32
    %47 = vector.broadcast %cst_16 : f32 to vector<8x64xf32>
    %48 = vector.broadcast %cst_17 : f32 to vector<8x64xf32>
    %49 = arith.select %46, %47, %48 : vector<8x64xi1>, vector<8x64xf32>
    %cst_18 = arith.constant dense<0.000000e+00> : vector<8x128xf32>
    %50 = tpu.matmul %24, %14, %cst_18 {dimension_numbers = #tpu.dot_dimension_numbers<[1], [0], [0], [1], [0, 0, 1, 1], [], []>} : vector<8x128xf32>, vector<128x128xf32>, vector<8x128xf32> -> vector<8x128xf32>
    %cst_19 = arith.constant dense<0.000000e+00> : vector<8x64xf32>
    %51 = tpu.matmul %50, %6, %cst_19 {dimension_numbers = #tpu.dot_dimension_numbers<[1], [1], [0], [0], [0, 0, 1, 0], [], []>} : vector<8x128xf32>, vector<64x128xf32>, vector<8x64xf32> -> vector<8x64xf32>
    %cst_20 = arith.constant 0.176776692 : f32
    %52 = vector.broadcast %cst_20 : f32 to vector<8x64xf32>
    %53 = arith.mulf %51, %52 : vector<8x64xf32>
    %cst_21 = arith.constant -1.000000e+30 : f32
    %54 = vector.broadcast %cst_21 : f32 to vector<8x64xf32>
    %55 = arith.select %37, %53, %54 : vector<8x64xi1>, vector<8x64xf32>
    %cst_22 = arith.constant dense<0xFF800000> : vector<8xf32>
    %56 = vector.multi_reduction <maximumf>, %55, %cst_22 [1] : vector<8x64xf32> to vector<8xf32>
    %57 = vector.shape_cast %56 : vector<8xf32> to vector<8x1xf32>
    %58 = vector.broadcast %57 : vector<8x1xf32> to vector<8x64xf32>
    %59 = arith.subf %55, %58 : vector<8x64xf32>
    %60 = math.exp %59 : vector<8x64xf32>
    %cst_23 = arith.constant dense<0.000000e+00> : vector<8xf32>
    %61 = vector.multi_reduction <add>, %60, %cst_23 [1] : vector<8x64xf32> to vector<8xf32>
    %62 = vector.shape_cast %61 : vector<8xf32> to vector<8x1xf32>
    %63 = tpu.reciprocal %62 : vector<8x1xf32> -> vector<8x1xf32>
    %64 = vector.broadcast %63 : vector<8x1xf32> to vector<8x64xf32>
    %65 = arith.mulf %60, %64 : vector<8x64xf32>
    %cst_24 = arith.constant dense<0.000000e+00> : vector<8x128xf32>
    %66 = tpu.matmul %65, %7, %cst_24 {dimension_numbers = #tpu.dot_dimension_numbers<[1], [0], [0], [1], [0, 0, 1, 1], [], []>} : vector<8x64xf32>, vector<64x128xf32>, vector<8x128xf32> -> vector<8x128xf32>
    %cst_25 = arith.constant dense<0.000000e+00> : vector<8x128xf32>
    %67 = tpu.matmul %66, %15, %cst_25 {dimension_numbers = #tpu.dot_dimension_numbers<[1], [0], [0], [1], [0, 0, 1, 1], [], []>} : vector<8x128xf32>, vector<128x128xf32>, vector<8x128xf32> -> vector<8x128xf32>
    %68 = arith.addf %67, %24 : vector<8x128xf32>
    %cst_26 = arith.constant dense<0.000000e+00> : vector<8x128xf32>
    %69 = tpu.matmul %68, %16, %cst_26 {dimension_numbers = #tpu.dot_dimension_numbers<[1], [0], [0], [1], [0, 0, 1, 1], [], []>} : vector<8x128xf32>, vector<128x128xf32>, vector<8x128xf32> -> vector<8x128xf32>
    %cst_27 = arith.constant dense<0.000000e+00> : vector<8x64xf32>
    %70 = tpu.matmul %69, %8, %cst_27 {dimension_numbers = #tpu.dot_dimension_numbers<[1], [1], [0], [0], [0, 0, 1, 0], [], []>} : vector<8x128xf32>, vector<64x128xf32>, vector<8x64xf32> -> vector<8x64xf32>
    %cst_28 = arith.constant 0.176776692 : f32
    %71 = vector.broadcast %cst_28 : f32 to vector<8x64xf32>
    %72 = arith.mulf %70, %71 : vector<8x64xf32>
    %cst_29 = arith.constant -1.000000e+30 : f32
    %73 = vector.broadcast %cst_29 : f32 to vector<8x64xf32>
    %74 = arith.select %43, %72, %73 : vector<8x64xi1>, vector<8x64xf32>
    %cst_30 = arith.constant dense<0xFF800000> : vector<8xf32>
    %75 = vector.multi_reduction <maximumf>, %74, %cst_30 [1] : vector<8x64xf32> to vector<8xf32>
    %76 = vector.shape_cast %75 : vector<8xf32> to vector<8x1xf32>
    %77 = vector.broadcast %76 : vector<8x1xf32> to vector<8x64xf32>
    %78 = arith.subf %74, %77 : vector<8x64xf32>
    %79 = math.exp %78 : vector<8x64xf32>
    %cst_31 = arith.constant dense<0.000000e+00> : vector<8xf32>
    %80 = vector.multi_reduction <add>, %79, %cst_31 [1] : vector<8x64xf32> to vector<8xf32>
    %81 = vector.shape_cast %80 : vector<8xf32> to vector<8x1xf32>
    %82 = tpu.reciprocal %81 : vector<8x1xf32> -> vector<8x1xf32>
    %83 = vector.broadcast %82 : vector<8x1xf32> to vector<8x64xf32>
    %84 = arith.mulf %79, %83 : vector<8x64xf32>
    %cst_32 = arith.constant dense<0.000000e+00> : vector<8x128xf32>
    %85 = tpu.matmul %84, %9, %cst_32 {dimension_numbers = #tpu.dot_dimension_numbers<[1], [0], [0], [1], [0, 0, 1, 1], [], []>} : vector<8x64xf32>, vector<64x128xf32>, vector<8x128xf32> -> vector<8x128xf32>
    %cst_33 = arith.constant dense<0.000000e+00> : vector<8x128xf32>
    %86 = tpu.matmul %85, %17, %cst_33 {dimension_numbers = #tpu.dot_dimension_numbers<[1], [0], [0], [1], [0, 0, 1, 1], [], []>} : vector<8x128xf32>, vector<128x128xf32>, vector<8x128xf32> -> vector<8x128xf32>
    %87 = arith.addf %86, %68 : vector<8x128xf32>
    %88 = vector.shape_cast %19 : vector<1x128xf32> to vector<1x128xf32>
    %89 = vector.broadcast %88 : vector<1x128xf32> to vector<8x128xf32>
    %cst_34 = arith.constant dense<0.000000e+00> : vector<8x64xf32>
    %90 = tpu.matmul %89, %10, %cst_34 {dimension_numbers = #tpu.dot_dimension_numbers<[1], [1], [0], [0], [0, 0, 1, 0], [], []>} : vector<8x128xf32>, vector<64x128xf32>, vector<8x64xf32> -> vector<8x64xf32>
    %cst_35 = arith.constant 0.176776692 : f32
    %91 = vector.broadcast %cst_35 : f32 to vector<8x64xf32>
    %92 = arith.mulf %90, %91 : vector<8x64xf32>
    %93 = arith.addf %92, %49 : vector<8x64xf32>
    %cst_36 = arith.constant -1.000000e+30 : f32
    %94 = vector.broadcast %cst_36 : f32 to vector<8x64xf32>
    %95 = arith.select %34, %93, %94 : vector<8x64xi1>, vector<8x64xf32>
    %cst_37 = arith.constant dense<0xFF800000> : vector<8xf32>
    %96 = vector.multi_reduction <maximumf>, %95, %cst_37 [1] : vector<8x64xf32> to vector<8xf32>
    %97 = vector.shape_cast %96 : vector<8xf32> to vector<8x1xf32>
    %98 = vector.broadcast %97 : vector<8x1xf32> to vector<8x64xf32>
    %99 = arith.subf %95, %98 : vector<8x64xf32>
    %100 = math.exp %99 : vector<8x64xf32>
    %cst_38 = arith.constant dense<0.000000e+00> : vector<8xf32>
    %101 = vector.multi_reduction <add>, %100, %cst_38 [1] : vector<8x64xf32> to vector<8xf32>
    %102 = vector.shape_cast %101 : vector<8xf32> to vector<8x1xf32>
    %103 = tpu.reciprocal %102 : vector<8x1xf32> -> vector<8x1xf32>
    %104 = vector.broadcast %103 : vector<8x1xf32> to vector<8x64xf32>
    %105 = arith.mulf %100, %104 : vector<8x64xf32>
    %cst_39 = arith.constant dense<0.000000e+00> : vector<8x128xf32>
    %106 = tpu.matmul %105, %11, %cst_39 {dimension_numbers = #tpu.dot_dimension_numbers<[1], [0], [0], [1], [0, 0, 1, 1], [], []>} : vector<8x64xf32>, vector<64x128xf32>, vector<8x128xf32> -> vector<8x128xf32>
    %cst_40 = arith.constant dense<0.000000e+00> : vector<8x128xf32>
    %107 = tpu.matmul %106, %18, %cst_40 {dimension_numbers = #tpu.dot_dimension_numbers<[1], [0], [0], [1], [0, 0, 1, 1], [], []>} : vector<8x128xf32>, vector<128x128xf32>, vector<8x128xf32> -> vector<8x128xf32>
    %108 = vector.broadcast %20 : vector<1x128xf32> to vector<8x128xf32>
    %109 = arith.addf %107, %108 : vector<8x128xf32>
    %110 = arith.addf %87, %109 : vector<8x128xf32>
    %111 = arith.truncf %110 : vector<8x128xf32> to vector<8x128xbf16>
    %c0_41 = arith.constant 0 : index
    %c0_42 = arith.constant 0 : index
    %112 = vector.load %arg6[%c0_41, %c0_42] : memref<8x128xbf16, #tpu.memory_space<vmem>>, vector<8x128xbf16>
    tpu.vector_store %arg6[%c0_41, %c0_42], %111 {strides = array<i32>} : memref<8x128xbf16, #tpu.memory_space<vmem>>, vector<8x128xbf16>,
    return
  }
  func.func @transform_0(%arg0: i32) -> (i32, i32) {
    %c0_i32 = arith.constant 0 : i32
    %c0_i32_0 = arith.constant 0 : i32
    return %arg0, %c0_i32 : i32, i32
  }
  func.func @transform_1(%arg0: i32) -> (i32, i32) {
    %c0_i32 = arith.constant 0 : i32
    %c0_i32_0 = arith.constant 0 : i32
    return %arg0, %c0_i32 : i32, i32
  }
  func.func @transform_2(%arg0: i32) -> (i32, i32) {
    %c0_i32 = arith.constant 0 : i32
    %c0_i32_0 = arith.constant 0 : i32
    %c0_i32_1 = arith.constant 0 : i32
    return %c0_i32, %c0_i32_0 : i32, i32
  }
  func.func @transform_3(%arg0: i32) -> (i32, i32) {
    %c0_i32 = arith.constant 0 : i32
    %c0_i32_0 = arith.constant 0 : i32
    %c0_i32_1 = arith.constant 0 : i32
    return %c0_i32, %c0_i32_0 : i32, i32
  }
  func.func @transform_4(%arg0: i32) -> (i32, i32) {
    %c0_i32 = arith.constant 0 : i32
    %c0_i32_0 = arith.constant 0 : i32
    %c0_i32_1 = arith.constant 0 : i32
    return %c0_i32, %c0_i32_0 : i32, i32
  }
  func.func @transform_5(%arg0: i32) -> (i32, i32) {
    %c0_i32 = arith.constant 0 : i32
    %c0_i32_0 = arith.constant 0 : i32
    return %arg0, %c0_i32 : i32, i32
  }
}

</mosaic_0001>

<bundles_post_ra>
// kernel: double_perceiver_agent_forward.1
= control target key start
LH: loop header
LB: loop body
LE: loop exit
PB: predicated region body
PF: predicated region fallthrough
CT: control target
= control target key end

     0   :  { %v2114_v1 = vmov 0   ;;  %vm117_vm0 = vcmask 130048   ;;  %v2115_v7 = vmov 0.0|0.0   ;;  %vm2116_vm1 = vmmov 0   ;;  %s2656_s2 = inlined_call_operand.vmem [shape: bf16[16,768], index: 2, kind: input, shape index: {}]   ;;  %s2657_s0 = inlined_call_operand.vmem [shape: bf16[64,16], index: 0, kind: input, shape index: {}]   ;;  %s2658_s3 = inlined_call_operand.vmem [shape: bf16[128,640], index: 3, kind: input, shape index: {}]   ;;  %s2659_s1 = inlined_call_operand.vmem [shape: bf16[8,32], index: 1, kind: input, shape index: {}]   ;;  %s2660_s4 = inlined_call_operand.vmem [shape: f32[3,768], index: 4, kind: input, shape index: {}]   ;;  %s2661_s5 = inlined_call_operand.vmem [shape: bf16[8,128], index: 5, kind: output, shape index: {}]  }
   0x1   :  { %v2033_v0 = vld [vmem:[%s2656_s2 + $0x4] ss:$24 sps:$4 sm:$0xff]   ;;  %162 = vmatprep.mubr.bf16.mxu0 %v2114_v1  ;;  %172 = vmatprep.mubr.bf16.mxu1 %v2114_v1  ;;  %v2035_v2 = vld [vmem:[%s2656_s2] ss:$24 sps:$4 sm:$0xff]   ;;  %v2037_v4 = vld [vmem:[%s2657_s0 + $0x8] sm:$0xff]   ;;  %v2117_v18 = vmov 0.0   ;;  %v37_v23 = vlaneseq }
   0x2   :  { %130 = vmatprep.subr.bf16.mxu0 %v2033_v0  ;;  %1983 = vmatprep.subr.bf16.mxu1 %v2033_v0  ;;  %v2036_v3 = vld [vmem:[%s2657_s0] sm:$0xff]   ;;  %v2041_v8 = vld [vmem:[%s2657_s0 + $0x10] sm:$0xff]   ;;  %v2042_v10 = vld [vmem:[%s2657_s0 + $0x18] sm:$0xff]   ;;  %vm481_vm2 = vcmask 261120   ;;  %vm642_vm8 = vcmask 523264  }
   0x3   :  { %131 = vmatpush1.bf16.msra.mxu0 %v2035_v2  ;;  %1984 = vmatpush1.bf16.msra.mxu1 %v2035_v2  ;;  %v2038_v5 = vld [vmem:[%s2656_s2 + $0x8] ss:$24 sps:$4 sm:$0xff]   ;;  %v2040_v6 = vld [vmem:[%s2656_s2 + $0xc] ss:$24 sps:$4 sm:$0xff]   ;;  %v2240_v24 = vshrl.u32 %v37_v23, 7 }
   0x4   :  { %203 = vmatprep.subr.bf16.mxu1 %v2040_v6  ;;  %v2059_v9 = vld [vmem:[%s2656_s2 + $0x10] ss:$24 sps:$4 sm:$0xff]   ;;  %v2061_v11 = vld [vmem:[%s2656_s2 + $0x14] ss:$24 sps:$4 sm:$0xff]   ;;  %v2229_v21 = vld [vmem:[%s2659_s1] sm:$0xf] }
   0x5   :  { %276 = vmatprep.subr.bf16.mxu0 %v2061_v11  ;;  %v2043_v12 = vld [vmem:[%s2658_s3] ss:$20 sps:$4 sm:$0xff]   ;;  %v2045_v13 = vld [vmem:[%s2658_s3 + $0x28] ss:$20 sps:$4 sm:$0xff]   ;;  %v2047_v14 = vld [vmem:[%s2658_s3 + $0x50] ss:$20 sps:$4 sm:$0xff]   ;;  %v480_v22 = vunpack.c.l.bf16 %v2229_v21 }
   0x6   :  { %1345 = vmatmul.mubr.msk.bf16.vlgmr.msra.gmra.mrb[0].mxu0 %vm117_vm0, %v2036_v3  ;;  %1346 = vmatmul.mubr.msk.bf16.vlgmr.msra.gmra.mrb[0].mxu1 %vm117_vm0, %v2037_v4  ;;  %v2049_v15 = vld [vmem:[%s2658_s3 + $0x78] ss:$20 sps:$4 sm:$0xff]   ;;  %v2051_v16 = vld [vmem:[%s2658_s3 + $0xa0] ss:$20 sps:$4 sm:$0xff]   ;;  %v2053_v17 = vld [vmem:[%s2658_s3 + $0xc8] ss:$20 sps:$4 sm:$0xff]  }
   0x7   :  { %182 = vmatprep.mubr.bf16.mxu1 %v2114_v1  ;;  %204 = vmatpush1.bf16.msra.mxu1 %v2038_v5  ;;  %v2055_v19 = vld [vmem:[%s2658_s3 + $0xf0] ss:$20 sps:$4 sm:$0xff]   ;;  %v2057_v20 = vld [vmem:[%s2658_s3 + $0x118] ss:$20 sps:$4 sm:$0xff]   ;;  %v39_v25 = vsub.s32 0, %v2240_v24  ;;  %v43_v27 = vsub.s32 1, %v2240_v24 }
   0x8   :  { %308 = vmatprep.mubr.bf16.mxu0 %v2114_v1  ;;  %1791 = vmatprep.subr.bf16.mxu1 %v2115_v7  ;;  %v2246_v26 = vld [vmem:[%s2660_s4] ss:$4 sm:$0x3f]  ;;  %v55_v52 = vsub.s32 4, %v2240_v24  ;;  %v59_v54 = vsub.s32 5, %v2240_v24 }
   0x9   :  { %277 = vmatpush1.bf16.msra.mxu0 %v2059_v9  ;;  %v40_v28 = vrot.slane %v2246_v26, %v39_v25  ;;  %v44_v31 = vrot.slane %v2246_v26, %v43_v27 }
   0xa   :  { %1815 = vmatprep.subr.bf16.mxu0 %v2115_v7  ;;  %v2257_v61 = vrot.slane %v2246_v26, %v55_v52  ;;  %v2260_v63 = vrot.slane %v2246_v26, %v59_v54 }
   0xe   :  { %1347 = vmatmul.mubr.msk.bf16.gmra.mrb[4].mxu1 %vm117_vm0, %v2041_v8  ;;  %1353 = vmatmul.mubr.msk.bf16.vlgmr.msra.gmra.mrb[4].mxu0 %vm117_vm0, %v2036_v3 }
   0xf   :  { %192 = vmatprep.mubr.bf16.mxu1 %v2114_v1  ;;  %318 = vmatprep.mubr.bf16.mxu0 %v2114_v1 }
  0x16   :  { %1348 = vmatmul.mubr.msk.bf16.gmra.mrb[8].mxu1 %vm117_vm0, %v2042_v10  ;;  %1354 = vmatmul.mubr.msk.bf16.gmra.mrb[8].mxu0 %vm117_vm0, %v2037_v4 }
  0x17   :  { %235 = vmatprep.mubr.bf16.mxu1 %v2114_v1  ;;  %328 = vmatprep.mubr.bf16.mxu0 %v2114_v1 }
  0x1e   :  { %1349 = vmatmul.mubr.msk.bf16.vlgmr.msra.gmra.mrb[12].mxu1 %vm117_vm0, %v2036_v3  ;;  %1355 = vmatmul.mubr.msk.bf16.gmra.mrb[12].mxu0 %vm117_vm0, %v2041_v8 }
  0x1f   :  { %1793 = vmatpush3.bf16.msra.mxu1 %v2043_v12  ;;  %245 = vmatprep.mubr.bf16.mxu1 %v2114_v1  ;;  %v47_v12 = vsub.s32 2, %v2240_v24 }
  0x20   :  { %1794 = vmatprep.subr.bf16.mxu1 %v2115_v7  ;;  %338 = vmatprep.mubr.bf16.mxu0 %v2114_v1 }
  0x23   :  { %1796 = vmatpush3.bf16.msra.mxu1 %v2045_v13 }
  0x24   :  { %1797 = vmatprep.subr.bf16.mxu1 %v2115_v7 }
  0x26   :  { %1350 = vmatmul.mubr.msk.bf16.gmra.mrb[16].mxu1 %vm117_vm0, %v2037_v4  ;;  %1356 = vmatmul.mubr.msk.bf16.gmra.mrb[16].mxu0 %vm117_vm0, %v2042_v10 }
  0x27   :  { %1799 = vmatpush3.bf16.msra.mxu1 %v2047_v14  ;;  %255 = vmatprep.mubr.bf16.mxu1 %v2114_v1 }
  0x28   :  { %1800 = vmatprep.subr.bf16.mxu1 %v2115_v7  ;;  %1553 = vmatprep.mubr.msk.f32.mxu0 %vm2116_vm1, %v2117_v18 }
  0x2b   :  { %1802 = vmatpush3.bf16.msra.mxu1 %v2049_v15 }
  0x2c   :  { %1803 = vmatprep.subr.bf16.mxu1 %v2115_v7 }
  0x2e   :  { %1351 = vmatmul.mubr.msk.bf16.gmra.mrb[20].mxu1 %vm117_vm0, %v2041_v8 }
  0x2f   :  { %1805 = vmatpush3.bf16.msra.mxu1 %v2051_v16  ;;  %265 = vmatprep.mubr.bf16.mxu1 %v2114_v1 }
  0x30   :  { %1806 = vmatprep.subr.bf16.mxu1 %v2115_v7 }
  0x33   :  { %1808 = vmatpush3.bf16.msra.mxu1 %v2053_v17  ;;  %v51_v17 = vsub.s32 3, %v2240_v24 }
  0x34   :  { %1809 = vmatprep.subr.bf16.mxu1 %v2115_v7 }
  0x36   :  { %1352 = vmatmul.mubr.msk.bf16.gmra.mrb[24].mxu1 %vm117_vm0, %v2042_v10 }
  0x37   :  { %1811 = vmatpush3.bf16.msra.mxu1 %v2055_v19  ;;  %1534 = vmatprep.mubr.msk.f32.mxu1 %vm2116_vm1, %v2117_v18 }
  0x38   :  { %1812 = vmatprep.subr.bf16.mxu1 %v2115_v7 }
  0x3b   :  { %1814 = vmatpush3.bf16.msra.mxu1 %v2057_v20 }
  0x3c   :  { %1827 = vmatprep.subr.bf16.mxu1 %v2115_v7 }
  0x3e   :  { %1535 = vmatmul.mubr.msk.f32.vlgmr.msra.gmra.mrb[28].mxu1 %vm481_vm2, %v480_v22 }
  0x3f   :  { %1572 = vmatprep.mubr.msk.f32.mxu1 %vm2116_vm1, %v2117_v18 }
  0xd9   :  { %v164_v29 = vpop.f32.mrb[0].mxu0  ;;  %v174_v30 = vpop.f32.mrb[0].mxu1 }
  0xda   :  { %v165_v32 = vadd.f32 %v164_v29, %v40_v28  ;;  %v166_v33 = vpop.f32.mrb[1].mxu0  ;;  %v176_v34 = vpop.f32.mrb[1].mxu1  ;;  %v175_v38 = vadd.f32 %v174_v30, %v40_v28  ;;  %v2283_v29 = vrot.slane %v2246_v26, %v47_v12 }
  0xdb   :  { %v167_v35 = vadd.f32 %v166_v33, %v44_v31  ;;  %v168_v36 = vpop.f32.mrb[2].mxu0  ;;  %v178_v37 = vpop.f32.mrb[2].mxu1  ;;  %v177_v43 = vadd.f32 %v176_v34, %v44_v31 }
  0xdc   :  { %v169_v39 = vadd.f32 %v168_v36, %v40_v28  ;;  %v179_v40 = vadd.f32 %v178_v37, %v40_v28  ;;  %v170_v41 = vpop.f32.mrb[3].mxu0  ;;  %v180_v42 = vpop.f32.mrb[3].mxu1 }
  0xdd   :  { %v171_v44 = vadd.f32 %v170_v41, %v44_v31  ;;  %v181_v45 = vadd.f32 %v180_v42, %v44_v31 }
  0xde   :  { %v1816_v46 = vpack.c.bf16 %v169_v39, %v165_v32  ;;  %v1819_v47 = vpack.c.bf16 %v179_v40, %v175_v38 }
  0xdf   :  { %v1828_v48 = vpack.c.bf16 %v171_v44, %v167_v35  ;;  %v1831_v49 = vpack.c.bf16 %v181_v45, %v177_v43 }
  0xe0   :  { %1817 = vmatpush3.bf16.xpose.msra.mxu0 %v1816_v46 }
  0xe1   :  { %v184_v50 = vpop.f32.mrb[4].mxu1  ;;  %1829 = vmatpush3.bf16.msra.mxu1 %v1828_v48  ;;  %1818 = vmatprep.subr.bf16.mxu0 %v2115_v7  ;;  %v310_v1 = vpop.f32.mrb[4].mxu0 }
  0xe2   :  { %v186_v51 = vpop.f32.mrb[5].mxu1  ;;  %1830 = vmatprep.subr.bf16.mxu1 %v2115_v7  ;;  %v185_v55 = vadd.f32 %v184_v50, %v40_v28  ;;  %v2265_v3 = vadd.f32 %v310_v1, %v2257_v61  ;;  %v312_v4 = vpop.f32.mrb[5].mxu0 }
  0xe3   :  { %v188_v53 = vpop.f32.mrb[6].mxu1  ;;  %v187_v58 = vadd.f32 %v186_v51, %v44_v31  ;;  %v2268_v6 = vadd.f32 %v312_v4, %v2260_v63  ;;  %v314_v8 = vpop.f32.mrb[6].mxu0 }
  0xe4   :  { %v189_v56 = vadd.f32 %v188_v53, %v40_v28  ;;  %v190_v57 = vpop.f32.mrb[7].mxu1  ;;  %v2272_v13 = vadd.f32 %v314_v8, %v2257_v61  ;;  %v316_v14 = vpop.f32.mrb[7].mxu0 }
  0xe5   :  { %v191_v59 = vadd.f32 %v190_v57, %v44_v31  ;;  %1832 = vmatpush3.bf16.msra.mxu1 %v1831_v49  ;;  %v2276_v19 = vadd.f32 %v316_v14, %v2260_v63 }
  0xe6   :  { %v1822_v60 = vpack.c.bf16 %v189_v56, %v185_v55  ;;  %1833 = vmatprep.subr.bf16.mxu1 %v2115_v7  ;;  %v1936_v25 = vpack.c.bf16 %v2272_v13, %v2265_v3  ;;  %v1360_v3 = vld [vmem:[%s2660_s4 + $0x1] ss:$0 sm:$0xff] }
  0xe7   :  { %v1834_v62 = vpack.c.bf16 %v191_v59, %v187_v58 }
  0xe8   :  { %1820 = vmatpush3.bf16.xpose.msra.mxu0 %v1819_v47 }
  0xe9   :  { %v194_v0 = vpop.f32.mrb[8].mxu1  ;;  %1835 = vmatpush3.bf16.msra.mxu1 %v1834_v62  ;;  %1821 = vmatprep.subr.bf16.mxu0 %v2115_v7  ;;  %v320_v32 = vpop.f32.mrb[8].mxu0 }
  0xea   :  { %v196_v2 = vpop.f32.mrb[9].mxu1  ;;  %1836 = vmatprep.subr.bf16.mxu1 %v2115_v7  ;;  %v195_v9 = vadd.f32 %v194_v0, %v40_v28  ;;  %v2290_v34 = vadd.f32 %v320_v32, %v2257_v61  ;;  %v322_v35 = vpop.f32.mrb[9].mxu0 }
  0xeb   :  { %v198_v5 = vpop.f32.mrb[10].mxu1  ;;  %v197_v15 = vadd.f32 %v196_v2, %v44_v31  ;;  %v2294_v37 = vadd.f32 %v322_v35, %v2260_v63  ;;  %v324_v38 = vpop.f32.mrb[10].mxu0 }
  0xec   :  { %v199_v10 = vadd.f32 %v198_v5, %v40_v28  ;;  %v200_v11 = vpop.f32.mrb[11].mxu1  ;;  %v1948_v28 = vpack.c.bf16 %v2276_v19, %v2268_v6  ;;  %v2303_v41 = vadd.f32 %v324_v38, %v2257_v61  ;;  %v326_v42 = vpop.f32.mrb[11].mxu0  ;;  %v2094_v19 = vld [vmem:[%s2658_s3 + $0x10] ss:$20 sps:$4 sm:$0xff]  }
  0xed   :  { %v201_v16 = vadd.f32 %v200_v11, %v44_v31  ;;  %v2286_v31 = vrot.slane %v2246_v26, %v51_v17  ;;  %v2312_v45 = vadd.f32 %v326_v42, %v2260_v63 }
  0xee   :  { %v1825_v20 = vpack.c.bf16 %v199_v10, %v195_v9  ;;  %v1939_v47 = vpack.c.bf16 %v2303_v41, %v2290_v34 }
  0xef   :  { %v1837_v27 = vpack.c.bf16 %v201_v16, %v197_v15  ;;  %v1951_v49 = vpack.c.bf16 %v2312_v45, %v2294_v37  ;;  %v2095_v37 = vld [vmem:[%s2658_s3 + $0x38] ss:$20 sps:$4 sm:$0xff]   ;;  %v2096_v45 = vld [vmem:[%s2658_s3 + $0x60] ss:$20 sps:$4 sm:$0xff]  }
  0xf0   :  { %1823 = vmatpush3.bf16.xpose.msra.mxu0 %v1822_v60 }
  0xf1   :  { %v237_v30 = vpop.f32.mrb[12].mxu1  ;;  %1838 = vmatpush3.bf16.msra.mxu1 %v1837_v27  ;;  %1824 = vmatprep.subr.bf16.mxu0 %v2115_v7  ;;  %v330_v51 = vpop.f32.mrb[12].mxu0 }
  0xf2   :  { %v239_v33 = vpop.f32.mrb[13].mxu1  ;;  %1839 = vmatprep.subr.bf16.mxu1 %v2115_v7  ;;  %v2297_v39 = vadd.f32 %v237_v30, %v2283_v29  ;;  %v2324_v53 = vadd.f32 %v330_v51, %v2257_v61  ;;  %v332_v54 = vpop.f32.mrb[13].mxu0 }
  0xf3   :  { %v241_v36 = vpop.f32.mrb[14].mxu1  ;;  %v2306_v43 = vadd.f32 %v239_v33, %v2286_v31  ;;  %v2327_v56 = vadd.f32 %v332_v54, %v2260_v63  ;;  %v334_v57 = vpop.f32.mrb[14].mxu0 }
  0xf4   :  { %v2300_v26 = vadd.f32 %v241_v36, %v2283_v29  ;;  %v243_v40 = vpop.f32.mrb[15].mxu1  ;;  %v2336_v62 = vadd.f32 %v334_v57, %v2257_v61  ;;  %v336_v0 = vpop.f32.mrb[15].mxu0 }
  0xf5   :  { %v2309_v44 = vadd.f32 %v243_v40, %v2286_v31  ;;  %v2345_v4 = vadd.f32 %v336_v0, %v2260_v63 }
  0xf6   :  { %v1888_v46 = vpack.c.bf16 %v2300_v26, %v2297_v39  ;;  %v1942_v8 = vpack.c.bf16 %v2336_v62, %v2324_v53  ;;  %v482_v39 = vsel %vm481_vm2, %v480_v22, 0.0 }
  0xf7   :  { %v1900_v48 = vpack.c.bf16 %v2309_v44, %v2306_v43 }
  0xf8   :  { %1826 = vmatpush3.bf16.xpose.msra.mxu0 %v1825_v20 }
  0xf9   :  { %v247_v50 = vpop.f32.mrb[16].mxu1  ;;  %1863 = vmatprep.subr.bf16.mxu0 %v2115_v7  ;;  %v340_v12 = vpop.f32.mrb[16].mxu0 }
  0xfa   :  { %v249_v52 = vpop.f32.mrb[17].mxu1  ;;  %v2330_v58 = vadd.f32 %v247_v50, %v2283_v29  ;;  %v2356_v15 = vadd.f32 %v340_v12, %v2257_v61  ;;  %v342_v16 = vpop.f32.mrb[17].mxu0 }
  0xfb   :  { %v251_v55 = vpop.f32.mrb[18].mxu1  ;;  %v2339_v1 = vadd.f32 %v249_v52, %v2286_v31  ;;  %v2359_v20 = vadd.f32 %v342_v16, %v2260_v63  ;;  %v344_v27 = vpop.f32.mrb[18].mxu0 }
  0xfc   :  { %v2333_v59 = vadd.f32 %v251_v55, %v2283_v29  ;;  %v253_v60 = vpop.f32.mrb[19].mxu1  ;;  %v2368_v35 = vadd.f32 %v344_v27, %v2257_v61  ;;  %v346_v36 = vpop.f32.mrb[19].mxu0 }
  0xfd   :  { %v2342_v2 = vadd.f32 %v253_v60, %v2286_v31  ;;  %v2377_v42 = vadd.f32 %v346_v36, %v2260_v63 }
  0xfe   :  { %v1891_v5 = vpack.c.bf16 %v2333_v59, %v2330_v58  ;;  %v1945_v51 = vpack.c.bf16 %v2368_v35, %v2356_v15 }
  0xff   :  { %v1903_v9 = vpack.c.bf16 %v2342_v2, %v2339_v1  ;;  %v2665_v6 = vpack.c.bf16 %v2377_v42, %v2359_v20  ;;  %v2101_v20 = vld [vmem:[%s2658_s3 + $0x128] ss:$20 sps:$4 sm:$0xff]  }
 0x101   :  { %v257_v11 = vpop.f32.mrb[20].mxu1 }
 0x102   :  { %v259_v14 = vpop.f32.mrb[21].mxu1  ;;  %v2362_v30 = vadd.f32 %v257_v11, %v2283_v29 }
 0x103   :  { %v261_v17 = vpop.f32.mrb[22].mxu1  ;;  %v2371_v38 = vadd.f32 %v259_v14, %v2286_v31 }
 0x104   :  { %v2365_v32 = vadd.f32 %v261_v17, %v2283_v29  ;;  %v263_v33 = vpop.f32.mrb[23].mxu1 }
 0x105   :  { %v2374_v40 = vadd.f32 %v263_v33, %v2286_v31  ;;  %v487_v33 = vmul.u32 8, %v2240_v24 }
 0x106   :  { %v1894_v50 = vpack.c.bf16 %v2365_v32, %v2362_v30 }
 0x107   :  { %v1906_v61 = vpack.c.bf16 %v2374_v40, %v2371_v38 }
 0x109   :  { %v267_v54 = vpop.f32.mrb[24].mxu1 }
 0x10a   :  { %v269_v55 = vpop.f32.mrb[25].mxu1  ;;  %v2388_v60 = vadd.f32 %v267_v54, %v2283_v29 }
 0x10b   :  { %v271_v57 = vpop.f32.mrb[26].mxu1  ;;  %v2394_v11 = vadd.f32 %v269_v55, %v2286_v31 }
 0x10c   :  { %v2391_v63 = vadd.f32 %v271_v57, %v2283_v29  ;;  %v273_v0 = vpop.f32.mrb[27].mxu1  ;;  %v486_v29 = vand.u32 127, %v37_v23 }
 0x10d   :  { %v2397_v12 = vadd.f32 %v273_v0, %v2286_v31  ;;  %v2093_v31 = vld [vmem:[%s2658_s3 + $0x124] ss:$20 sps:$4 sm:$0xff]  }
 0x10e   :  { %v1897_v14 = vpack.c.bf16 %v2391_v63, %v2388_v60  ;;  %v2407_v36 = vsub.s32 %v486_v29, %v487_v33  ;;  %v2087_v63 = vld [vmem:[%s2658_s3 + $0x34] ss:$20 sps:$4 sm:$0xff]  }
 0x10f   :  { %v1909_v16 = vpack.c.bf16 %v2397_v12, %v2394_v11  ;;  %v2088_v11 = vld [vmem:[%s2658_s3 + $0x5c] ss:$20 sps:$4 sm:$0xff]   ;;  %v2089_v12 = vld [vmem:[%s2658_s3 + $0x84] ss:$20 sps:$4 sm:$0xff]  }
 0x110   :  { %vm489_vm3 = vcmp.ge.s32.totalorder %v2407_v36, 0  ;;  %vm490_vm4 = vcmp.lt.s32.totalorder %v2407_v36, 8  ;;  %vm492_vm6 = vcmp.lt.s32.totalorder %v2407_v36, 5  ;;  %vm494_vm9 = vcmp.eq.s32.totalorder %v2407_v36, 0 }
 0x111   :  { %v566_v17 = vpop.f32.mrb[28].mxu1  ;;  %vm2411_vm5 = vmand %vm489_vm3, %vm490_vm4  ;;  %vm495_vm10 = vcmp.ge.s32.totalorder %v2407_v36, 5  ;;  %v2092_v36 = vld [vmem:[%s2658_s3 + $0xfc] ss:$20 sps:$4 sm:$0xff]  }
 0x112   :  { %v1536_v27 = vpop.f32.mrb[29].mxu1  ;;  %1554 = vmatmul.mubr.f32.vlgmr.msra.gmra.mrb[20].mxu0 %v566_v17  ;;  %vm493_vm7 = vmand %vm2411_vm5, %vm492_vm6 }
 0x113   :  { %1642 = vmatprep.mubr.msk.f32.mxu0 %vm2116_vm1, %v2117_v18  ;;  %vm496_vm11 = vmor %vm494_vm9, %vm495_vm10 }
 0x114   :  { %vm497_vm12 = vmand %vm2411_vm5, %vm496_vm11 }
 0x115   :  { %vm498_vm13 = vmand %vm2411_vm5, %vm494_vm9 }
 0x116   :  { %v499_v44 = vsel %vm498_vm13, 0.6931472, %v2117_v18 }
 0x1e5   :  { %v636_v54 = vpop.f32.mrb[20].mxu0 }
 0x1e6   :  { %v640_v55 = vmul.f32 0.17677669, %v636_v54  ;;  %v1555_v23 = vpop.f32.mrb[21].mxu0  ;;  %v2062_v54 = vld [vmem:[%s2658_s3 + $0x4] ss:$20 sps:$4 sm:$0xff]  }
 0x1e8   :  { %v641_v24 = vsel %vm493_vm7, %v640_v55, -1e+30  ;;  %v2063_v55 = vld [vmem:[%s2658_s3 + $0x2c] ss:$20 sps:$4 sm:$0xff]  }
 0x1e9   :  { %v643_v57 = vsel %vm642_vm8, %v641_v24, -inf }
 0x1ea   :  { %644 = vmax.xlane.f32.xlu0 %v643_v57  ;;  %v2067_v57 = vld [vmem:[%s2658_s3 + $0xcc] ss:$20 sps:$4 sm:$0xff]  }
 0x277   :  { %v645_v0 = vpop.xlane.xlu0 %644 }
 0x278   :  { %v646_v17 = vsub.f32 %v641_v24, %v645_v0  ;;  %v2066_v24 = vld [vmem:[%s2658_s3 + $0xa4] ss:$20 sps:$4 sm:$0xff]   ;;  %v2068_v0 = vld [vmem:[%s2658_s3 + $0xf4] ss:$20 sps:$4 sm:$0xff]  }
 0x27a   :  { %v647_v27 = vmul.f32 1.442695, %v646_v17  ;;  %v2069_v17 = vld [vmem:[%s2658_s3 + $0x11c] ss:$20 sps:$4 sm:$0xff]  }
 0x27c   :  { %2102 = vpow2.f32 %v647_v27  ;;  %v2070_v27 = vld [vmem:[%s2658_s3 + $0x8] ss:$20 sps:$4 sm:$0xff]  }
 0x27d   :  { %1865 = vmatpush3.bf16.msra.mxu0 %v2070_v27 }
 0x27e   :  { %1866 = vmatprep.subr.bf16.mxu0 %v2115_v7 }
 0x286   :  { %v2103_v29 = vpop.eup %2102 }
 0x287   :  { %v649_v33 = vsel %vm642_vm8, %v2103_v29, 0.0 }
 0x288   :  { %650 = vadd.xlane.f32.xlu0 %v649_v33  ;;  %v2074_v33 = vld [vmem:[%s2658_s3 + $0x58] ss:$20 sps:$4 sm:$0xff]  }
 0x315   :  { %v651_v52 = vpop.xlane.xlu0 %650 }
 0x316   :  { %2104 = vrcp.f32 %v651_v52  ;;  %v2064_v52 = vld [vmem:[%s2658_s3 + $0x54] ss:$20 sps:$4 sm:$0xff]  }
 0x320   :  { %v2105_v10 = vpop.eup %2104 }
 0x321   :  { %v653_v23 = vmul.f32 %v2105_v10, %v2103_v29  ;;  %v2065_v10 = vld [vmem:[%s2658_s3 + $0x7c] ss:$20 sps:$4 sm:$0xff]  }
 0x322   :  { %v2072_v29 = vld [vmem:[%s2658_s3 + $0x30] ss:$20 sps:$4 sm:$0xff]  }
 0x323   :  { %1573 = vmatmul.mubr.msk.f32.vlgmr.msra.gmra.mrb[30].mxu1 %vm642_vm8, %v653_v23  ;;  %1868 = vmatpush3.bf16.msra.mxu0 %v2072_v29  ;;  %v2078_v23 = vld [vmem:[%s2658_s3 + $0xa8] ss:$20 sps:$4 sm:$0xff]   ;;  %v2664_v29 = vpack.c.bf16 %v2345_v4, %v2327_v56  ;;  %v2099_v56 = vld [vmem:[%s2658_s3 + $0xd8] ss:$20 sps:$4 sm:$0xff]   ;;  %v2100_v4 = vld [vmem:[%s2658_s3 + $0x100] ss:$20 sps:$4 sm:$0xff]  }
 0x324   :  { %1841 = vmatpush3.bf16.msra.mxu1 %v2062_v54  ;;  %1607 = vmatprep.mubr.msk.f32.mxu1 %vm2116_vm1, %v2117_v18  ;;  %v2076_v54 = vld [vmem:[%s2658_s3 + $0x80] ss:$20 sps:$4 sm:$0xff]  }
 0x325   :  { %1842 = vmatprep.subr.bf16.mxu1 %v2115_v7  ;;  %1869 = vmatprep.subr.bf16.mxu0 %v2115_v7 }
 0x327   :  { %1871 = vmatpush3.bf16.msra.mxu0 %v2074_v33 }
 0x328   :  { %1844 = vmatpush3.bf16.msra.mxu1 %v2063_v55  ;;  %1872 = vmatprep.subr.bf16.mxu0 %v2115_v7  ;;  %v2080_v55 = vld [vmem:[%s2658_s3 + $0xd0] ss:$20 sps:$4 sm:$0xff]  }
 0x329   :  { %1845 = vmatprep.subr.bf16.mxu1 %v2115_v7 }
 0x32b   :  { %1874 = vmatpush3.bf16.msra.mxu0 %v2076_v54 }
 0x32c   :  { %1847 = vmatpush3.bf16.msra.mxu1 %v2064_v52  ;;  %1875 = vmatprep.subr.bf16.mxu0 %v2115_v7  ;;  %v2082_v52 = vld [vmem:[%s2658_s3 + $0xf8] ss:$20 sps:$4 sm:$0xff]  }
 0x32d   :  { %1848 = vmatprep.subr.bf16.mxu1 %v2115_v7 }
 0x32f   :  { %1877 = vmatpush3.bf16.msra.mxu0 %v2078_v23  ;;  %v1362_v23 = vld [vmem:[%s2660_s4 + $0x2] ss:$0 sm:$0xff] }
 0x330   :  { %1850 = vmatpush3.bf16.msra.mxu1 %v2065_v10  ;;  %1878 = vmatprep.subr.bf16.mxu0 %v2115_v7  ;;  %v2084_v10 = vld [vmem:[%s2658_s3 + $0x120] ss:$20 sps:$4 sm:$0xff]  }
 0x331   :  { %1851 = vmatprep.subr.bf16.mxu1 %v2115_v7 }
 0x333   :  { %1880 = vmatpush3.bf16.msra.mxu0 %v2080_v55 }
 0x334   :  { %1853 = vmatpush3.bf16.msra.mxu1 %v2066_v24  ;;  %1881 = vmatprep.subr.bf16.mxu0 %v2115_v7 }
 0x335   :  { %1854 = vmatprep.subr.bf16.mxu1 %v2115_v7 }
 0x337   :  { %1883 = vmatpush3.bf16.msra.mxu0 %v2082_v52 }
 0x338   :  { %1856 = vmatpush3.bf16.msra.mxu1 %v2067_v57  ;;  %1884 = vmatprep.subr.bf16.mxu0 %v2115_v7 }
 0x339   :  { %1857 = vmatprep.subr.bf16.mxu1 %v2115_v7 }
 0x33b   :  { %1886 = vmatpush3.bf16.msra.mxu0 %v2084_v10 }
 0x33c   :  { %1859 = vmatpush3.bf16.msra.mxu1 %v2068_v0  ;;  %1899 = vmatprep.subr.bf16.mxu0 %v2115_v7 }
 0x33d   :  { %1860 = vmatprep.subr.bf16.mxu1 %v2115_v7 }
 0x340   :  { %1862 = vmatpush3.bf16.msra.mxu1 %v2069_v17 }
 0x341   :  { %1887 = vmatprep.subr.bf16.mxu1 %v2115_v7 }
 0x3f6   :  { %v723_v24 = vpop.f32.mrb[30].mxu1 }
 0x3f7   :  { %v1574_v57 = vpop.f32.mrb[31].mxu1  ;;  %1608 = vmatmul.mubr.f32.vlgmr.msra.gmra.mrb[32].mxu1 %v723_v24 }
 0x3f8   :  { %1889 = vmatpush3.bf16.xpose.msra.mxu1 %v1888_v46  ;;  %1661 = vmatprep.mubr.msk.f32.mxu1 %vm2116_vm1, %v2117_v18 }
 0x3f9   :  { %1890 = vmatprep.subr.bf16.mxu1 %v2115_v7 }
 0x400   :  { %1892 = vmatpush3.bf16.xpose.msra.mxu1 %v1891_v5 }
 0x401   :  { %1893 = vmatprep.subr.bf16.mxu1 %v2115_v7 }
 0x408   :  { %1895 = vmatpush3.bf16.xpose.msra.mxu1 %v1894_v50 }
 0x409   :  { %1896 = vmatprep.subr.bf16.mxu1 %v2115_v7 }
 0x410   :  { %1898 = vmatpush3.bf16.xpose.msra.mxu1 %v1897_v14  ;;  %v2090_v14 = vld [vmem:[%s2658_s3 + $0xac] ss:$20 sps:$4 sm:$0xff]  }
 0x411   :  { %1935 = vmatprep.subr.bf16.mxu1 %v2115_v7 }
 0x4ca   :  { %v793_v26 = vpop.f32.mrb[32].mxu1 }
 0x4cb   :  { %v2508_v46 = vadd.f32 %v793_v26, %v482_v39  ;;  %v1609_v58 = vpop.f32.mrb[33].mxu1 }
 0x4cd   :  { %1643 = vmatmul.mubr.f32.vlgmr.msra.gmra.mrb[22].mxu0 %v2508_v46  ;;  %v1985_v55 = vadd.f32 %v1362_v23, %v2508_v46 }
 0x4ce   :  { %1901 = vmatpush3.bf16.msra.mxu0 %v1900_v48  ;;  %1680 = vmatprep.mubr.msk.f32.mxu0 %vm2116_vm1, %v2117_v18 }
 0x4cf   :  { %1902 = vmatprep.subr.bf16.mxu0 %v2115_v7 }
 0x4d2   :  { %1904 = vmatpush3.bf16.msra.mxu0 %v1903_v9 }
 0x4d3   :  { %1905 = vmatprep.subr.bf16.mxu0 %v2115_v7 }
 0x4d6   :  { %1907 = vmatpush3.bf16.msra.mxu0 %v1906_v61  ;;  %v2086_v61 = vld [vmem:[%s2658_s3 + $0xc] ss:$20 sps:$4 sm:$0xff]  }
 0x4d7   :  { %1908 = vmatprep.subr.bf16.mxu0 %v2115_v7 }
 0x4da   :  { %1910 = vmatpush3.bf16.msra.mxu0 %v1909_v16  ;;  %v2091_v16 = vld [vmem:[%s2658_s3 + $0xd4] ss:$20 sps:$4 sm:$0xff]  }
 0x4db   :  { %1911 = vmatprep.subr.bf16.mxu0 %v2115_v7 }
 0x5a0   :  { %v863_v21 = vpop.f32.mrb[22].mxu0 }
 0x5a1   :  { %v1644_v22 = vpop.f32.mrb[23].mxu0  ;;  %1662 = vmatmul.mubr.f32.vlgmr.msra.gmra.mrb[34].mxu1 %v863_v21 }
 0x5a2   :  { %1937 = vmatpush3.bf16.xpose.msra.mxu1 %v1936_v25  ;;  %1734 = vmatprep.mubr.msk.f32.mxu1 %vm2116_vm1, %v2117_v18 }
 0x5a3   :  { %1938 = vmatprep.subr.bf16.mxu1 %v2115_v7 }
 0x5aa   :  { %1940 = vmatpush3.bf16.xpose.msra.mxu1 %v1939_v47 }
 0x5ab   :  { %1941 = vmatprep.subr.bf16.mxu1 %v2115_v7 }
 0x5b2   :  { %1943 = vmatpush3.bf16.xpose.msra.mxu1 %v1942_v8 }
 0x5b3   :  { %1944 = vmatprep.subr.bf16.mxu1 %v2115_v7 }
 0x5ba   :  { %1946 = vmatpush3.bf16.xpose.msra.mxu1 %v1945_v51 }
 0x5c1   :  { %1735 = vmatmul.mubr.f32.vlgmr.msra.gmra.mrb[36].mxu1 %v1360_v3 }
 0x674   :  { %v933_v13 = vpop.f32.mrb[34].mxu1 }
 0x675   :  { %v937_v25 = vmul.f32 0.17677669, %v933_v13  ;;  %v1663_v34 = vpop.f32.mrb[35].mxu1 }
 0x677   :  { %v938_v41 = vsel %vm497_vm12, %v937_v25, -1e+30 }
 0x678   :  { %v939_v43 = vsel %vm642_vm8, %v938_v41, -inf }
 0x679   :  { %940 = vmax.xlane.f32.xlu1 %v939_v43 }
 0x694   :  { %v1163_v47 = vpop.f32.mrb[36].mxu1 }
 0x695   :  { %v1167_v48 = vmul.f32 0.17677669, %v1163_v47  ;;  %v1736_v53 = vpop.f32.mrb[37].mxu1 }
 0x697   :  { %v1168_v59 = vadd.f32 %v1167_v48, %v499_v44 }
 0x699   :  { %v1169_v62 = vsel %vm2411_vm5, %v1168_v59, -1e+30 }
 0x69a   :  { %v1170_v1 = vsel %vm642_vm8, %v1169_v62, -inf }
 0x69b   :  { %1171 = vmax.xlane.f32.xlu0 %v1170_v1 }
 0x706   :  { %v941_v2 = vpop.xlane.xlu1 %940 }
 0x707   :  { %v942_v5 = vsub.f32 %v938_v41, %v941_v2 }
 0x709   :  { %v943_v8 = vmul.f32 1.442695, %v942_v5 }
 0x70b   :  { %2106 = vpow2.f32 %v943_v8 }
 0x715   :  { %v2107_v9 = vpop.eup %2106 }
 0x716   :  { %v945_v15 = vsel %vm642_vm8, %v2107_v9, 0.0 }
 0x717   :  { %946 = vadd.xlane.f32.xlu1 %v945_v15 }
 0x728   :  { %v1172_v30 = vpop.xlane.xlu0 %1171 }
 0x729   :  { %v1173_v32 = vsub.f32 %v1169_v62, %v1172_v30 }
 0x72b   :  { %v1174_v35 = vmul.f32 1.442695, %v1173_v32 }
 0x72d   :  { %2108 = vpow2.f32 %v1174_v35 }
 0x737   :  { %v2109_v38 = vpop.eup %2108 }
 0x738   :  { %v1176_v40 = vsel %vm642_vm8, %v2109_v38, 0.0 }
 0x739   :  { %1177 = vadd.xlane.f32.xlu1 %v1176_v40 }
 0x7a4   :  { %v947_v50 = vpop.xlane.xlu1 %946 }
 0x7a5   :  { %2110 = vrcp.f32 %v947_v50 }
 0x7af   :  { %v2111_v51 = vpop.eup %2110 }
 0x7b0   :  { %v949_v60 = vmul.f32 %v2111_v51, %v2107_v9 }
 0x7b2   :  { %1681 = vmatmul.mubr.msk.f32.vlgmr.msra.gmra.mrb[24].mxu0 %vm642_vm8, %v949_v60 }
 0x7b3   :  { %1913 = vmatpush3.bf16.msra.mxu0 %v2086_v61  ;;  %1715 = vmatprep.mubr.msk.f32.mxu0 %vm2116_vm1, %v2117_v18 }
 0x7b4   :  { %1914 = vmatprep.subr.bf16.mxu0 %v2115_v7 }
 0x7b7   :  { %1916 = vmatpush3.bf16.msra.mxu0 %v2087_v63 }
 0x7b8   :  { %1917 = vmatprep.subr.bf16.mxu0 %v2115_v7 }
 0x7bb   :  { %1919 = vmatpush3.bf16.msra.mxu0 %v2088_v11 }
 0x7bc   :  { %1920 = vmatprep.subr.bf16.mxu0 %v2115_v7 }
 0x7bf   :  { %1922 = vmatpush3.bf16.msra.mxu0 %v2089_v12 }
 0x7c0   :  { %1923 = vmatprep.subr.bf16.mxu0 %v2115_v7 }
 0x7c3   :  { %1925 = vmatpush3.bf16.msra.mxu0 %v2090_v14 }
 0x7c4   :  { %1926 = vmatprep.subr.bf16.mxu0 %v2115_v7 }
 0x7c6   :  { %v1178_v0 = vpop.xlane.xlu1 %1177 }
 0x7c7   :  { %1928 = vmatpush3.bf16.msra.mxu0 %v2091_v16  ;;  %2112 = vrcp.f32 %v1178_v0 }
 0x7c8   :  { %1929 = vmatprep.subr.bf16.mxu0 %v2115_v7 }
 0x7cb   :  { %1931 = vmatpush3.bf16.msra.mxu0 %v2092_v36 }
 0x7cc   :  { %1932 = vmatprep.subr.bf16.mxu0 %v2115_v7 }
 0x7cf   :  { %1934 = vmatpush3.bf16.msra.mxu0 %v2093_v31 }
 0x7d0   :  { %1947 = vmatprep.subr.bf16.mxu0 %v2115_v7 }
 0x7d1   :  { %v2113_v33 = vpop.eup %2112 }
 0x885   :  { %v1019_v17 = vpop.f32.mrb[24].mxu0 }
 0x886   :  { %v1682_v27 = vpop.f32.mrb[25].mxu0  ;;  %1716 = vmatmul.mubr.f32.vlgmr.msra.gmra.mrb[26].mxu0 %v1019_v17 }
 0x887   :  { %1949 = vmatpush3.bf16.msra.mxu0 %v1948_v28  ;;  %1753 = vmatprep.mubr.msk.f32.mxu0 %vm2116_vm1, %v2117_v18  ;;  %v1180_v28 = vmul.f32 %v2113_v33, %v2109_v38 }
 0x888   :  { %1950 = vmatprep.subr.bf16.mxu0 %v2115_v7 }
 0x88b   :  { %1952 = vmatpush3.bf16.msra.mxu0 %v1951_v49  ;;  %v2097_v49 = vld [vmem:[%s2658_s3 + $0x88] ss:$20 sps:$4 sm:$0xff]  }
 0x88c   :  { %1953 = vmatprep.subr.bf16.mxu0 %v2115_v7 }
 0x88f   :  { %1955 = vmatpush3.bf16.msra.mxu0 %v2664_v29 }
 0x890   :  { %1956 = vmatprep.subr.bf16.mxu0 %v2115_v7 }
 0x893   :  { %1958 = vmatpush3.bf16.msra.mxu0 %v2665_v6 }
 0x894   :  { %1959 = vmatprep.subr.bf16.mxu0 %v2115_v7 }
 0x896   :  { %1754 = vmatmul.mubr.msk.f32.vlgmr.msra.gmra.mrb[28].mxu0 %vm642_vm8, %v1180_v28 }
 0x897   :  { %1961 = vmatpush3.bf16.msra.mxu0 %v2094_v19  ;;  %1788 = vmatprep.mubr.msk.f32.mxu0 %vm2116_vm1, %v2117_v18  ;;  %v2098_v18 = vld [vmem:[%s2658_s3 + $0xb0] ss:$20 sps:$4 sm:$0xff]  }
 0x898   :  { %1962 = vmatprep.subr.bf16.mxu0 %v2115_v7 }
 0x89b   :  { %1964 = vmatpush3.bf16.msra.mxu0 %v2095_v37 }
 0x89c   :  { %1965 = vmatprep.subr.bf16.mxu0 %v2115_v7 }
 0x89f   :  { %1967 = vmatpush3.bf16.msra.mxu0 %v2096_v45 }
 0x8a0   :  { %1968 = vmatprep.subr.bf16.mxu0 %v2115_v7 }
 0x8a3   :  { %1970 = vmatpush3.bf16.msra.mxu0 %v2097_v49 }
 0x8a4   :  { %1971 = vmatprep.subr.bf16.mxu0 %v2115_v7 }
 0x8a7   :  { %1973 = vmatpush3.bf16.msra.mxu0 %v2098_v18 }
 0x8a8   :  { %1974 = vmatprep.subr.bf16.mxu0 %v2115_v7 }
 0x8ab   :  { %1976 = vmatpush3.bf16.msra.mxu0 %v2099_v56 }
 0x8ac   :  { %1977 = vmatprep.subr.bf16.mxu0 %v2115_v7 }
 0x8af   :  { %1979 = vmatpush3.bf16.msra.mxu0 %v2100_v4 }
 0x8b0   :  { %1980 = vmatprep.subr.bf16.mxu0 %v2115_v7 }
 0x8b3   :  { %1982 = vmatpush3.bf16.msra.mxu0 %v2101_v20 }
 0x969   :  { %v1250_v42 = vpop.f32.mrb[28].mxu0 }
 0x96a   :  { %v1755_v54 = vpop.f32.mrb[29].mxu0  ;;  %1789 = vmatmul.mubr.f32.vlgmr.msra.gmra.mrb[26].mxu0 %v1250_v42 }
 0xa3d   :  { %v1324_v52 = vpop.f32.mrb[26].mxu0 }
 0xa3e   :  { %v1986_v10 = vadd.f32 %v1985_v55, %v1324_v52  ;;  %v1790_v24 = vpop.f32.mrb[27].mxu0 }
 0xa40   :  { %v1329_v57 = vpack.c.bf16 %v1986_v10, %v1986_v10 }
 0xa42   :  { %1330 = vst [vmem:[%s2661_s5] sm:$0xf] %v1329_v57 }

</bundles_post_ra>
